<compile_context>
chip_gen: v7x
topology: tpu7x:2x2x1
jax: 0.10.0
libtpu: 0.0.40
codegen_flags: <defaults>
</compile_context>

<pallas_src>
import jax
import jax.numpy as jnp
from jax.experimental import pallas as pl
from jax.experimental.pallas import tpu as pltpu


def _round_up(n, m):
    return ((n + m - 1) // m) * m


def _fusion_classifier_kernel(x_ref, w_ref, b_ref, o_ref):
    # x_ref: (TM, Ff) batch tile; w_ref: (Ff, Of) and b_ref: (1, Of) VMEM-resident.
    logits = jnp.dot(x_ref[...], w_ref[...], preferred_element_type=jnp.float32)
    logits = logits + b_ref[...].astype(jnp.float32)      # (1, Of) broadcasts
    # sigmoid; logits stay f32 through the epilogue (safe on v5e: VPU/EUP in f32).
    out = 1.0 / (1.0 + jnp.exp(-logits))
    o_ref[...] = out.astype(o_ref.dtype)


def _pick_fold(B, F, O):
    """Largest power-of-two row fold with fold*O <= 128 and fold*F a multiple of
    128 lanes; prefer a fold that divides B so no padding pass over x is needed."""
    if O >= 128 or 128 % O != 0:
        return 1
    max_fold = 128 // O
    fold = max_fold
    while fold > 1 and not (B % fold == 0 and (fold * F) % 128 == 0):
        fold //= 2
    if fold == 1 and (max_fold * F) % 128 == 0 and B > max_fold:
        # No clean divisor of B: a (< max_fold)-row zero-pad is cheaper than a
        # lane-sparse O-wide output for any non-trivial batch.
        fold = max_fold
    return fold


def _pick_tile_rows(rows, row_bytes, target_bytes, split_rows=256):
    """Batch-tile rows: multiple of 8, <= rows, ~target_bytes of x per step, and
    >= 2 grid steps for large batches so v7x's two TensorCores both get work."""
    if rows <= 8:
        return rows                                  # full-dim block (always legal)
    max_tm = (rows // 8) * 8                         # largest 8-multiple <= rows
    tm = max(8, min(max_tm, (target_bytes // max(row_bytes, 1)) // 8 * 8))
    if tm >= rows and rows >= split_rows:            # would collapse to grid == 1
        tm = max(8, min(max_tm, _round_up(-(-rows // 2), 8)))
    return tm


def fusion_classifier(x, w_t, b, *, x_tile_bytes=4 * 1024 * 1024):
    """sigmoid(x @ w_t + b).

    x:   (B, F) fusion embeddings (f32 or bf16 — dtype preserved for HBM bytes)
    w_t: (F, O) pre-transposed nn.Linear weight
    b:   (O,)   bias
    """
    B, F = x.shape
    O = w_t.shape[1]
    out_dtype = jnp.promote_types(x.dtype, w_t.dtype)

    # NOTE: for tiny batches (B <~ 256) a plain fused XLA `sigmoid(x @ w_t + b)`
    # in the producer of x avoids the standalone-kernel round trip entirely;
    # we always run the Pallas kernel here so it is exercised.

    fold = _pick_fold(B, F, O)
    B_pad = _round_up(B, fold)
    if B_pad != B:
        x = jnp.pad(x, ((0, B_pad - B), (0, 0)))     # < fold extra rows (rare path)
    rows, Ff, Of = B_pad // fold, F * fold, O * fold

    x_f = x.reshape(rows, Ff)                        # metadata-only row fold
    if fold > 1:
        # Block-diagonal weight: fold copies of w_t, so the i-th F-wide slice of a
        # folded row only reaches output lanes [i*O, (i+1)*O).
        w_f = jnp.kron(jnp.eye(fold, dtype=w_t.dtype), w_t)
        b_f = jnp.tile(b.reshape(1, O), (1, fold))
    else:
        w_f = w_t
        b_f = b.reshape(1, O)

    tm = _pick_tile_rows(rows, Ff * x.dtype.itemsize, x_tile_bytes)
    grid = (pl.cdiv(rows, tm),)

    # Honest VMEM budget: last dim padded to 128 lanes, second-to-last to 8
    # sublanes; x/out double-buffered, W/bias counted twice to be safe.
    def _blk_bytes(r, c, itemsize):
        return _round_up(max(r, 1), 8) * _round_up(c, 128) * itemsize

    out_isz = jnp.dtype(out_dtype).itemsize
    vmem_need = (2 * _blk_bytes(tm, Ff, x.dtype.itemsize)
                 + 2 * _blk_bytes(tm, Of, out_isz)
                 + 2 * _blk_bytes(Ff, Of, w_f.dtype.itemsize)
                 + 2 * _blk_bytes(1, Of, b_f.dtype.itemsize))
    vmem_limit = int(min(max(2 * vmem_need, 32 * 1024 * 1024), 48 * 1024 * 1024))

    cost = pl.CostEstimate(
        flops=2 * rows * Ff * Of,
        transcendentals=rows * Of,
        bytes_accessed=(rows * Ff * x.dtype.itemsize
                        + Ff * Of * w_f.dtype.itemsize
                        + Of * b_f.dtype.itemsize
                        + rows * Of * out_isz),
    )

    out = pl.pallas_call(
        _fusion_classifier_kernel,
        out_shape=jax.ShapeDtypeStruct((rows, Of), out_dtype),
        grid_spec=pl.GridSpec(
            grid=grid,
            in_specs=[
                pl.BlockSpec((tm, Ff), lambda i: (i, 0)),   # x: batch-tiled, pipelined
                pl.BlockSpec((Ff, Of), lambda i: (0, 0)),   # W: VMEM-resident
                pl.BlockSpec((1, Of), lambda i: (0, 0)),    # b: VMEM-resident
            ],
            out_specs=pl.BlockSpec((tm, Of), lambda i: (i, 0)),
        ),
        compiler_params=pltpu.CompilerParams(
            dimension_semantics=("parallel",),              # independent batch tiles
            vmem_limit_bytes=vmem_limit,
        ),
        cost_estimate=cost,
    )(x_f, w_f, b_f)

    out = out.reshape(B_pad, O)                             # un-fold lanes -> rows
    return out[:B] if B_pad != B else out


if __name__ == "__main__":
    # Small shapes consistent with the module: fusion_dim=32, output_dim=8, batch=4.
    B, FUSION_DIM, OUTPUT_DIM = 4, 32, 8

    key = jax.random.PRNGKey(0)
    kx, kw, kb = jax.random.split(key, 3)

    # PyTorch nn.Linear init style: W is (out, in); we store W^T as (in, out).
    bound = 1.0 / (FUSION_DIM ** 0.5)
    w_t = jax.random.uniform(kw, (FUSION_DIM, OUTPUT_DIM),
                             minval=-bound, maxval=bound, dtype=jnp.float32)
    bias = jax.random.uniform(kb, (OUTPUT_DIM,),
                              minval=-bound, maxval=bound, dtype=jnp.float32)
    x = jax.random.normal(kx, (B, FUSION_DIM), dtype=jnp.float32)

    out = jax.block_until_ready(fusion_classifier(x, w_t, bias))

    # Reference check in plain JAX.
    ref = jax.nn.sigmoid(x @ w_t + bias[None, :])
    assert out.shape == (B, OUTPUT_DIM)
    assert jnp.allclose(out, ref, atol=1e-5, rtol=1e-5), "mismatch vs reference"

    print("KERNEL_OK")
</pallas_src>

<mosaic_0001>
module attributes {stable_mosaic.version = 11 : i64} {
  func.func @_fusion_classifier_kernel(%arg0: i32, %arg1: memref<1x128xf32, #tpu.memory_space<vmem>>, %arg2: memref<128x32xf32, #tpu.memory_space<vmem>>, %arg3: memref<1x32xf32, #tpu.memory_space<vmem>>, %arg4: memref<1x32xf32, #tpu.memory_space<vmem>>) attributes {dimension_semantics = [#tpu.dimension_semantics<parallel>], iteration_bounds = array<i64: 1>, scalar_prefetch = 0 : i64, scratch_operands = 0 : i64, tpu.core_type = #tpu.core_type<tc>, window_params = [{transform_indices = @transform_0, window_bounds = array<i64: 1, 128>}, {pipeline_mode = #tpu.pipeline_mode<synchronous>, transform_indices = @transform_1, window_bounds = array<i64: 128, 32>}, {pipeline_mode = #tpu.pipeline_mode<synchronous>, transform_indices = @transform_2, window_bounds = array<i64: 1, 32>}, {transform_indices = @transform_3, window_bounds = array<i64: 1, 32>}]} {
    %c0 = arith.constant 0 : index
    %c0_0 = arith.constant 0 : index
    %0 = vector.load %arg1[%c0, %c0_0] : memref<1x128xf32, #tpu.memory_space<vmem>>, vector<1x128xf32>
    %c0_1 = arith.constant 0 : index
    %c0_2 = arith.constant 0 : index
    %1 = vector.load %arg2[%c0_1, %c0_2] : memref<128x32xf32, #tpu.memory_space<vmem>>, vector<128x32xf32>
    %cst = arith.constant dense<0.000000e+00> : vector<1x32xf32>
    %2 = tpu.matmul %0, %1, %cst {dimension_numbers = #tpu.dot_dimension_numbers<[1], [0], [0], [1], [0, 0, 1, 1], [], []>} : vector<1x128xf32>, vector<128x32xf32>, vector<1x32xf32> -> vector<1x32xf32>
    %c0_3 = arith.constant 0 : index
    %c0_4 = arith.constant 0 : index
    %3 = vector.load %arg3[%c0_3, %c0_4] : memref<1x32xf32, #tpu.memory_space<vmem>>, vector<1x32xf32>
    %4 = arith.addf %2, %3 : vector<1x32xf32>
    %cst_5 = arith.constant 0.000000e+00 : f32
    %5 = vector.broadcast %cst_5 : f32 to vector<1x32xf32>
    %6 = arith.subf %5, %4 : vector<1x32xf32>
    %7 = math.exp %6 : vector<1x32xf32>
    %cst_6 = arith.constant 1.000000e+00 : f32
    %8 = vector.broadcast %cst_6 : f32 to vector<1x32xf32>
    %9 = arith.addf %8, %7 : vector<1x32xf32>
    %cst_7 = arith.constant 1.000000e+00 : f32
    %10 = vector.broadcast %cst_7 : f32 to vector<1x32xf32>
    %11 = arith.divf %10, %9 : vector<1x32xf32>
    %c0_8 = arith.constant 0 : index
    %c0_9 = arith.constant 0 : index
    %12 = vector.load %arg4[%c0_8, %c0_9] : memref<1x32xf32, #tpu.memory_space<vmem>>, vector<1x32xf32>
    tpu.vector_store %arg4[%c0_8, %c0_9], %11 {strides = array<i32>} : memref<1x32xf32, #tpu.memory_space<vmem>>, vector<1x32xf32>,
    return
  }
  func.func @transform_0(%arg0: i32) -> (i32, i32) {
    %c0_i32 = arith.constant 0 : i32
    %c0_i32_0 = arith.constant 0 : i32
    return %arg0, %c0_i32 : i32, i32
  }
  func.func @transform_1(%arg0: i32) -> (i32, i32) {
    %c0_i32 = arith.constant 0 : i32
    %c0_i32_0 = arith.constant 0 : i32
    %c0_i32_1 = arith.constant 0 : i32
    return %c0_i32, %c0_i32_0 : i32, i32
  }
  func.func @transform_2(%arg0: i32) -> (i32, i32) {
    %c0_i32 = arith.constant 0 : i32
    %c0_i32_0 = arith.constant 0 : i32
    %c0_i32_1 = arith.constant 0 : i32
    return %c0_i32, %c0_i32_0 : i32, i32
  }
  func.func @transform_3(%arg0: i32) -> (i32, i32) {
    %c0_i32 = arith.constant 0 : i32
    %c0_i32_0 = arith.constant 0 : i32
    return %arg0, %c0_i32 : i32, i32
  }
}

</mosaic_0001>

<bundles_post_ra>
// kernel: tpu_custom_call.1
= control target key start
LH: loop header
LB: loop body
LE: loop exit
PB: predicated region body
PF: predicated region fallthrough
CT: control target
= control target key end

     0   :  { %v233_v3 = vmov 0.0|0.0   ;;  %vm234_vm0 = vmmov 0   ;;  %v235_v6 = vmov 0.0   ;;  %s323_s0 = inlined_call_operand.vmem [shape: f32[1,128], index: 0, kind: input, shape index: {}]   ;;  %s324_s1 = inlined_call_operand.vmem [shape: f32[128,32], index: 1, kind: input, shape index: {}]   ;;  %s325_s2 = inlined_call_operand.vmem [shape: f32[1,32], index: 2, kind: input, shape index: {}]   ;;  %s326_s3 = inlined_call_operand.hbm [shape: f32[1,32], index: 3, kind: output, shape index: {}]  }
   0x1   :  { %v16_v0 = vld [vmem:[%s324_s1] sm:$0xff]  ;;  %v17_v1 = vld [vmem:[%s324_s1 + $0x8] sm:$0xff]  ;;  %v18_v2 = vld [vmem:[%s324_s1 + $0x10] sm:$0xff]  ;;  %177 = vmatprep.subr.bf16.mxu0 %v233_v3  ;;  %174 = vmatprep.mubr.msk.f32.mxu0 %vm234_vm0, %v235_v6 }
   0x2   :  { %v178_v4 = vpack.c.bf16 %v17_v1, %v16_v0  ;;  %v19_v5 = vld [vmem:[%s324_s1 + $0x18] sm:$0xff]  ;;  %v20_v8 = vld [vmem:[%s324_s1 + $0x20] sm:$0xff]  ;;  %v21_v9 = vld [vmem:[%s324_s1 + $0x28] sm:$0xff] }
   0x3   :  { %v181_v7 = vpack.c.bf16 %v19_v5, %v18_v2 }
   0x4   :  { %179 = vmatpush3.bf16.msra.mxu0 %v178_v4 }
   0x5   :  { %180 = vmatprep.subr.bf16.mxu0 %v233_v3 }
   0x6   :  { %8 = vsyncpa [#allocation3], 0  ;;  %v184_v10 = vpack.c.bf16 %v21_v9, %v20_v8  ;;  %v22_v11 = vld [vmem:[%s324_s1 + $0x30] sm:$0xff]  ;;  %v23_v12 = vld [vmem:[%s324_s1 + $0x38] sm:$0xff]  ;;  %vm109_vm1 = vcmask 253952  }
   0x7   :  { %v187_v13 = vpack.c.bf16 %v23_v12, %v22_v11  ;;  %v24_v14 = vld [vmem:[%s324_s1 + $0x40] sm:$0xff]  ;;  %v25_v15 = vld [vmem:[%s324_s1 + $0x48] sm:$0xff]  ;;  %v26_v17 = vld [vmem:[%s324_s1 + $0x50] sm:$0xff] }
   0x8   :  { %182 = vmatpush3.bf16.msra.mxu0 %v181_v7  ;;  %v190_v16 = vpack.c.bf16 %v25_v15, %v24_v14  ;;  %v27_v18 = vld [vmem:[%s324_s1 + $0x58] sm:$0xff]  ;;  %v28_v20 = vld [vmem:[%s324_s1 + $0x60] sm:$0xff]  ;;  %v29_v21 = vld [vmem:[%s324_s1 + $0x68] sm:$0xff] }
   0x9   :  { %183 = vmatprep.subr.bf16.mxu0 %v233_v3  ;;  %v193_v19 = vpack.c.bf16 %v27_v18, %v26_v17  ;;  %v196_v22 = vpack.c.bf16 %v29_v21, %v28_v20  ;;  %v30_v23 = vld [vmem:[%s324_s1 + $0x70] sm:$0xff]  ;;  %v31_v24 = vld [vmem:[%s324_s1 + $0x78] sm:$0xff]  ;;  %v15_v26 = vld [vmem:[%s323_s0] sm:$0x1]  ;;  %s236_s1 = smov [#allocation2]  }
   0xa   :  { %v199_v25 = vpack.c.bf16 %v31_v24, %v30_v23  ;;  %v32_v27 = vld [vmem:[%s325_s2] sm:$0x1]  ;;  %s117_s21 = sshll.u32 %s236_s1, 4  ;;  %s118_s21 = int_to_ptr.vmem [resolvable:$true] %s117_s21 }
   0xb   :  { %s209_s0 = scalar_lea.vmem %s118_s21, 16  ;;  %s213_s22 = scalar_lea.vmem %s118_s21, 32 }
   0xc   :  { %185 = vmatpush3.bf16.msra.mxu0 %v184_v10  ;;  %p210_p0 = scmp.ne.s32.totalorder %s118_s21, %s209_s0  ;;  %p214_p1 = scmp.lt.s32.totalorder %s118_s21, %s118_s21 }
   0xd   :  { %186 = vmatprep.subr.bf16.mxu0 %v233_v3  ;;  %p215_p2 = scmp.lt.s32.totalorder %s213_s22, %s209_s0 }
   0xf   :  { %p216_p3 = por %p215_p2, %p214_p1 }
  0x10   :  { %188 = vmatpush3.bf16.msra.mxu0 %v187_v13 }
  0x11   :  { %189 = vmatprep.subr.bf16.mxu0 %v233_v3  ;;  %p217_p4 = pnand %p216_p3, %p210_p0 }
  0x14   :  { %191 = vmatpush3.bf16.msra.mxu0 %v190_v16 }
  0x15   :  { %192 = vmatprep.subr.bf16.mxu0 %v233_v3 }
  0x18   :  { %194 = vmatpush3.bf16.msra.mxu0 %v193_v19 }
  0x19   :  { %195 = vmatprep.subr.bf16.mxu0 %v233_v3 }
  0x1c   :  { %197 = vmatpush3.bf16.msra.mxu0 %v196_v22 }
  0x1d   :  { %198 = vmatprep.subr.bf16.mxu0 %v233_v3 }
  0x20   :  { %200 = vmatpush3.bf16.msra.mxu0 %v199_v25 }
  0x23   :  { %175 = vmatmul.mubr.f32.vlgmr.msra.gmra.mrb[0].mxu0 %v15_v26 }
  0xf6   :  { %v99_v28 = vpop.f32.mrb[0].mxu0 }
  0xf7   :  { %v100_v29 = vadd.f32 %v99_v28, %v32_v27  ;;  %v176_v30 = vpop.f32.mrb[1].mxu0 }
  0xf9   :  { %v103_v31 = vsub.f32 0.0, %v100_v29 }
  0xfb   :  { %v104_v32 = vmul.f32 1.442695, %v103_v31 }
  0xfd   :  { %205 = vpow2.f32 %v104_v32 }
 0x107   :  { %v206_v33 = vpop.eup %205 }
 0x108   :  { %v106_v34 = vadd.f32 1.0, %v206_v33 }
 0x10a   :  { %207 = vrcp.f32 %v106_v34 }
 0x114   :  { %v208_v35 = vpop.eup %207 }
 0x115   :  { %110 = vst.msk [vmem:[#allocation2] sm:$0x1] %vm109_vm1, %v208_v35 }
 0x116   :  { %220 = shalt.err (!%p217_p4)
}
 0x117   :  { %s221_s24 = scalar_lea.hbm %s326_s3, 16 }
 0x118   :  { %p222_p5 = scmp.ne.s32.totalorder %s326_s3, %s221_s24  ;;  %p225_p6 = scmp.lt.u32.totalorder %s221_s24, %s326_s3 }
 0x11a   :  { %p227_p7 = pnand %p225_p6, %p222_p5 }
 0x11c   :  { %230 = shalt.err (!%p227_p7)
}
 0x11d   :  { %120 = dma.vmem_to_hbm [thread:$0]  %s118_s21, 16, %s326_s3, [#allocation3]  }
 0x11e   :  { %231 = dma.done.wait [#allocation3], 16  }
 0x11f   :  { %232 = vsyncadd [#allocation3], 4294967280 }
 0x120   :  { %124 = vsyncpa [#allocation3], 1 }

</bundles_post_ra>
